<compile_context>
chip_gen: v5e
topology: v5e:2x2
jax: 0.10.0
libtpu: 0.0.40
codegen_flags: <defaults>
</compile_context>

<pallas_src>
import functools
from typing import NamedTuple

import jax
import jax.numpy as jnp
from jax.experimental import pallas as pl
from jax.experimental.pallas import tpu as pltpu


def _round_up(x, m):
    return ((x + m - 1) // m) * m


def _tpu_vmem_capacity():
    """Physical VMEM per TensorCore; conservative fallback if query fails."""
    try:
        info = pltpu.get_tpu_info()
        cap = getattr(info, "vmem_capacity_bytes", None)
        if cap:
            return int(cap)
    except Exception:
        pass
    return 64 * 1024 * 1024   # safe everywhere (v7x-sized)


def _pick_chunk(total, target):
    """Largest multiple-of-128 divisor of `total` that is <= target."""
    best = 128
    d = 128
    while d <= total:
        if total % d == 0 and d <= target:
            best = d
        d += 128
    return best


def _vmem_bytes(tm, th, cin, hpad, cpad, w_itemsize, out_itemsize):
    """Rough per-kernel VMEM footprint for the chosen tiling."""
    return (2 * w_itemsize * (tm * cin + cin * th + th * cpad)   # x, w1, w2 (double-buffered)
            + 2 * out_itemsize * tm * cpad                        # out block (double-buffered)
            + 4 * tm * cpad                                       # f32 accumulator scratch
            + 2 * 4 * tm * th                                     # f32 fc1/GELU intermediates
            + 2 * 4 * 8 * (hpad + cpad))                          # biases (sublane-padded)


class _MlpCfg(NamedTuple):
    Cin: int
    H: int
    Cout: int
    Hpad: int
    Cpad: int
    th: int
    nH: int
    compute_dtype: str
    gelu_approximate: bool
    tm_target: int
    vmem_budget: int


# ----------------------------------------------------------------------------
# Kernel
# ----------------------------------------------------------------------------
def mlp_kernel(x_ref, w1_ref, b1_ref, w2_ref, b2_ref, o_ref, acc_ref, *, approximate):
    # grid = (token_tiles, h_chunks); axis 1 is the streamed H reduction.
    # When nH == 1 the w1/w2 block indices are constant -> weights stay
    # VMEM-resident and are fetched from HBM exactly once.
    k = pl.program_id(1)

    @pl.when(k == 0)
    def _init():
        acc_ref[...] = jnp.zeros_like(acc_ref)

    # fc1 for this H chunk: [tm, Cin] @ [Cin, th] on the MXU, f32 accumulation.
    h = jnp.dot(x_ref[...], w1_ref[...], preferred_element_type=jnp.float32)
    h = h + b1_ref[...]
    # GELU in f32; tanh approximation by default (runs on the EUP slot).
    h = jax.nn.gelu(h, approximate=approximate)
    # fc2 partial product for this chunk, accumulated in f32 scratch.
    acc_ref[...] += jnp.dot(h.astype(w2_ref.dtype), w2_ref[...],
                            preferred_element_type=jnp.float32)

    @pl.when(k == pl.num_programs(1) - 1)
    def _finalize():
        # dropout with p=0.0 is the identity -> nothing to do.
        o_ref[...] = (acc_ref[...] + b2_ref[...]).astype(o_ref.dtype)


# ----------------------------------------------------------------------------
# One-time parameter preparation (hoisted out of the per-call hot path)
# ----------------------------------------------------------------------------
def make_mlp_params(w1, b1, w2, b2, *, compute_dtype=jnp.bfloat16,
                    gelu_approximate=True, th_target=512, tm_target=None,
                    force_th=None):
    """Cast / pad / reshape the weights once. Returns (params, cfg)."""
    Cin, H = w1.shape
    Cout = w2.shape[1]
    cdt = jnp.dtype(compute_dtype)

    Hpad = _round_up(H, 128)            # only to lane width, never to th
    Cpad = _round_up(Cout, 128)         # lane-dense output stores

    vmem_cap = _tpu_vmem_capacity()
    budget = (vmem_cap * 3) // 4        # ~48 MiB on v7x, ~96 MiB on v5e/v6e

    if force_th is not None:
        assert force_th % 128 == 0 and Hpad % force_th == 0
        th = int(force_th)
    else:
        # Resident weights if the whole (double-buffered) working set at a
        # modest tm fits the generation's VMEM budget; otherwise stream H.
        if _vmem_bytes(256, Hpad, Cin, Hpad, Cpad, cdt.itemsize, 4) <= budget:
            th = Hpad
        else:
            th = _pick_chunk(Hpad, th_target)
    nH = Hpad // th

    if tm_target is None:
        # Streamed weights need a large token tile (arithmetic intensity ~ tm
        # FLOP per weight byte) to clear the HBM roofline; resident weights
        # only need enough rows for MXU utilization.
        tm_target = 256 if nH == 1 else (1024 if budget >= 80 * 1024 * 1024 else 512)

    # Cast + zero-pad once. Zero padding is exact: padded H lanes give
    # gelu(0 + 0) = 0 times zero w2 rows; padded Cout columns / token rows
    # are sliced off in mlp_apply.
    w1c = w1.astype(cdt)
    w2c = w2.astype(cdt)
    b1p = b1.astype(jnp.float32)
    b2p = b2.astype(jnp.float32)
    if Hpad != H:
        w1c = jnp.pad(w1c, ((0, 0), (0, Hpad - H)))
        w2c = jnp.pad(w2c, ((0, Hpad - H), (0, 0)))
        b1p = jnp.pad(b1p, (0, Hpad - H))
    if Cpad != Cout:
        w2c = jnp.pad(w2c, ((0, 0), (0, Cpad - Cout)))
        b2p = jnp.pad(b2p, (0, Cpad - Cout))

    # [nH, Cin, th]: each streamed w1 chunk is one contiguous DMA.
    w1c = w1c.reshape(Cin, nH, th).transpose(1, 0, 2)
    b1p = b1p.reshape(1, Hpad)
    b2p = b2p.reshape(1, Cpad)

    cfg = _MlpCfg(Cin=int(Cin), H=int(H), Cout=int(Cout), Hpad=int(Hpad),
                  Cpad=int(Cpad), th=int(th), nH=int(nH),
                  compute_dtype=cdt.name, gelu_approximate=bool(gelu_approximate),
                  tm_target=int(tm_target), vmem_budget=int(budget))
    return (w1c, b1p, w2c, b2p), cfg


# ----------------------------------------------------------------------------
# Per-call apply (only x is cast/padded here)
# ----------------------------------------------------------------------------
@functools.partial(jax.jit, static_argnames=("cfg",))
def mlp_apply(x, params, cfg):
    """x: [N, Cin] -> [N, Cout]."""
    w1c, b1p, w2c, b2p = params
    N, Cin = x.shape
    assert Cin == cfg.Cin, "feature dim mismatch"

    cdt = jnp.dtype(cfg.compute_dtype)
    out_dtype = x.dtype
    out_itemsize = jnp.dtype(out_dtype).itemsize
    row_align = 16 if cdt.itemsize < 4 else 8     # bf16 needs sublane mult of 16

    Hpad, Cpad, th, nH = cfg.Hpad, cfg.Cpad, cfg.th, cfg.nH

    # --- token tile (static Python math; shapes are static under jit) ---
    tm = max(row_align, min(cfg.tm_target, _round_up(N, row_align)))
    tm = _round_up(tm, row_align)
    # Keep >=2 token tiles when N is large enough so v7x's two TensorCores can
    # split the "parallel" grid axis.
    if _round_up(N, tm) // tm < 2 and N >= 2 * 128:
        tm = _round_up(-(-N // 2), row_align)
    # Shrink tm if the footprint overshoots the VMEM budget.
    while (_vmem_bytes(tm, th, Cin, Hpad, Cpad, cdt.itemsize, out_itemsize)
           > cfg.vmem_budget and tm > 2 * row_align):
        tm = _round_up(tm // 2, row_align)

    Npad = _round_up(N, tm)

    xc = x.astype(cdt)
    if Npad != N:
        xc = jnp.pad(xc, ((0, Npad - N), (0, 0)))

    grid = (Npad // tm, nH)

    # --- cost estimate reflecting actual HBM traffic ---
    w_itemsize = cdt.itemsize
    weight_bytes = (Cin * Hpad + Hpad * Cpad) * w_itemsize
    weight_traffic = weight_bytes * (grid[0] if nH > 1 else 1)
    bytes_accessed = (Npad * Cin * w_itemsize + weight_traffic
                      + Npad * Cpad * out_itemsize + 4 * (Hpad + Cpad))
    flops = 2 * Npad * (Cin * Hpad + Hpad * Cpad)

    est = _vmem_bytes(tm, th, Cin, Hpad, Cpad, w_itemsize, out_itemsize)
    vmem_limit = int(min(cfg.vmem_budget, max(32 * 1024 * 1024, est + (est >> 2))))

    kernel = functools.partial(mlp_kernel, approximate=cfg.gelu_approximate)

    out = pl.pallas_call(
        kernel,
        out_shape=jax.ShapeDtypeStruct((Npad, Cpad), out_dtype),
        grid_spec=pltpu.PrefetchScalarGridSpec(
            num_scalar_prefetch=0,
            grid=grid,
            in_specs=[
                pl.BlockSpec((tm, Cin), lambda i, k: (i, 0)),          # x token tile
                pl.BlockSpec((None, Cin, th), lambda i, k: (k, 0, 0)), # w1 chunk (contiguous)
                pl.BlockSpec((1, th), lambda i, k: (0, k)),            # b1 chunk
                pl.BlockSpec((th, Cpad), lambda i, k: (k, 0)),         # w2 chunk (contiguous rows)
                pl.BlockSpec((1, Cpad), lambda i, k: (0, 0)),          # b2
            ],
            out_specs=pl.BlockSpec((tm, Cpad), lambda i, k: (i, 0)),
            scratch_shapes=[pltpu.VMEM((tm, Cpad), jnp.float32)],
        ),
        compiler_params=pltpu.CompilerParams(
            dimension_semantics=("parallel", "arbitrary"),
            vmem_limit_bytes=vmem_limit,
        ),
        cost_estimate=pl.CostEstimate(
            flops=flops,
            transcendentals=Npad * Hpad,
            bytes_accessed=bytes_accessed,
        ),
    )(xc, w1c, b1p, w2c, b2p)

    return out[:N, :cfg.Cout]


def mlp_pallas(x, w1, b1, w2, b2, **kwargs):
    """Convenience one-shot wrapper (prepares params every call; prefer
    make_mlp_params + mlp_apply when weights are reused)."""
    params, cfg = make_mlp_params(w1, b1, w2, b2, **kwargs)
    return mlp_apply(x, params, cfg)


def mlp_reference(x, w1, b1, w2, b2, compute_dtype=jnp.bfloat16, approximate=True):
    # Mirrors the kernel numerics: bf16 matmul inputs, f32 accumulation,
    # GELU in f32 with the same approximation flag.
    cdt = jnp.dtype(compute_dtype)
    h = jnp.dot(x.astype(cdt), w1.astype(cdt),
                preferred_element_type=jnp.float32) + b1
    h = jax.nn.gelu(h, approximate=approximate)
    o = jnp.dot(h.astype(cdt), w2.astype(cdt),
                preferred_element_type=jnp.float32) + b2
    return o.astype(x.dtype)


if __name__ == "__main__":
    key = jax.random.PRNGKey(0)
    (kx, kw1, kb1, kw2, kb2,
     kx2, kw3, kb3, kw4, kb4) = jax.random.split(key, 10)

    # ---- test 1: tiny ViT-style Mlp block (single tile, resident weights) ----
    batch, seq = 2, 8
    in_features, hidden_features = 32, 64
    out_features = in_features                      # out_features defaults to in_features

    x = jax.random.normal(kx, (batch, seq, in_features), dtype=jnp.float32)
    w1 = jax.random.normal(kw1, (in_features, hidden_features), jnp.float32) * 0.02
    b1 = jax.random.normal(kb1, (hidden_features,), jnp.float32) * 0.02
    w2 = jax.random.normal(kw2, (hidden_features, out_features), jnp.float32) * 0.02
    b2 = jax.random.normal(kb2, (out_features,), jnp.float32) * 0.02

    # Flatten (batch, seq) -> tokens for the kernel; restore afterwards (glue).
    x2d = x.reshape(batch * seq, in_features)
    params, cfg = make_mlp_params(w1, b1, w2, b2)
    out2d = mlp_apply(x2d, params, cfg)
    out = out2d.reshape(batch, seq, out_features)
    jax.block_until_ready(out)

    ref = mlp_reference(x2d, w1, b1, w2, b2).reshape(batch, seq, out_features)
    assert jnp.allclose(out, ref, atol=2e-3, rtol=2e-2), "test1 mismatch vs reference"

    # ---- test 2: streamed H chunks + multiple token tiles + padded N/Cout ----
    N2, Cin2, H2, Cout2 = 80, 32, 384, 48
    x2 = jax.random.normal(kx2, (N2, Cin2), jnp.float32)
    w3 = jax.random.normal(kw3, (Cin2, H2), jnp.float32) * 0.02
    b3 = jax.random.normal(kb3, (H2,), jnp.float32) * 0.02
    w4 = jax.random.normal(kw4, (H2, Cout2), jnp.float32) * 0.02
    b4 = jax.random.normal(kb4, (Cout2,), jnp.float32) * 0.02

    params2, cfg2 = make_mlp_params(w3, b3, w4, b4, force_th=128, tm_target=32)
    out2 = mlp_apply(x2, params2, cfg2)
    jax.block_until_ready(out2)

    ref2 = mlp_reference(x2, w3, b3, w4, b4)
    assert jnp.allclose(out2, ref2, atol=2e-3, rtol=2e-2), "test2 mismatch vs reference"

    print("KERNEL_OK")
</pallas_src>

<mosaic_0001>
module attributes {stable_mosaic.version = 11 : i64} {
  func.func @mlp_kernel(%arg0: i32, %arg1: i32, %arg2: memref<16x32xbf16, #tpu.memory_space<vmem>>, %arg3: memref<1x32x128xbf16, #tpu.memory_space<vmem>>, %arg4: memref<1x128xf32, #tpu.memory_space<vmem>>, %arg5: memref<128x128xbf16, #tpu.memory_space<vmem>>, %arg6: memref<1x128xf32, #tpu.memory_space<vmem>>, %arg7: memref<16x128xf32, #tpu.memory_space<vmem>>, %arg8: memref<16x128xf32, #tpu.memory_space<vmem>>) attributes {dimension_semantics = [#tpu.dimension_semantics<parallel>, #tpu.dimension_semantics<arbitrary>], iteration_bounds = array<i64: 1, 1>, scalar_prefetch = 0 : i64, scratch_operands = 1 : i64, tpu.core_type = #tpu.core_type<tc>, window_params = [{transform_indices = @transform_0, window_bounds = array<i64: 16, 32>}, {transform_indices = @transform_1, window_bounds = array<i64: 1, 32, 128>}, {transform_indices = @transform_2, window_bounds = array<i64: 1, 128>}, {transform_indices = @transform_3, window_bounds = array<i64: 128, 128>}, {pipeline_mode = #tpu.pipeline_mode<synchronous>, transform_indices = @transform_4, window_bounds = array<i64: 1, 128>}, {transform_indices = @transform_5, window_bounds = array<i64: 16, 128>}]} {
    %c0_i32 = arith.constant 0 : i32
    %0 = arith.cmpi eq, %arg1, %c0_i32 : i32
    %1 = arith.extui %0 : i1 to i32
    %c0_i32_0 = arith.constant 0 : i32
    %2 = arith.cmpi ne, %1, %c0_i32_0 : i32
    scf.if %2 {
      %cst_20 = arith.constant 0.000000e+00 : f32
      %32 = vector.broadcast %cst_20 : f32 to vector<16x128xf32>
      %c0_21 = arith.constant 0 : index
      %c0_22 = arith.constant 0 : index
      %33 = vector.load %arg8[%c0_21, %c0_22] : memref<16x128xf32, #tpu.memory_space<vmem>>, vector<16x128xf32>
      tpu.vector_store %arg8[%c0_21, %c0_22], %32 {strides = array<i32>} : memref<16x128xf32, #tpu.memory_space<vmem>>, vector<16x128xf32>,
    } else {
    }
    %c0 = arith.constant 0 : index
    %c0_1 = arith.constant 0 : index
    %3 = vector.load %arg2[%c0, %c0_1] : memref<16x32xbf16, #tpu.memory_space<vmem>>, vector<16x32xbf16>
    %c0_2 = arith.constant 0 : index
    %c0_3 = arith.constant 0 : index
    %c0_4 = arith.constant 0 : index
    %4 = vector.load %arg3[%c0_2, %c0_3, %c0_4] : memref<1x32x128xbf16, #tpu.memory_space<vmem>>, vector<1x32x128xbf16>
    %5 = vector.shape_cast %4 : vector<1x32x128xbf16> to vector<32x128xbf16>
    %cst = arith.constant dense<0.000000e+00> : vector<16x128xf32>
    %6 = tpu.matmul %3, %5, %cst {dimension_numbers = #tpu.dot_dimension_numbers<[1], [0], [0], [1], [0, 0, 1, 1], [], []>} : vector<16x32xbf16>, vector<32x128xbf16>, vector<16x128xf32> -> vector<16x128xf32>
    %c0_5 = arith.constant 0 : index
    %c0_6 = arith.constant 0 : index
    %7 = vector.load %arg4[%c0_5, %c0_6] : memref<1x128xf32, #tpu.memory_space<vmem>>, vector<1x128xf32>
    %8 = vector.broadcast %7 : vector<1x128xf32> to vector<16x128xf32>
    %9 = arith.addf %6, %8 : vector<16x128xf32>
    %10 = arith.mulf %9, %9 : vector<16x128xf32>
    %11 = arith.mulf %9, %10 : vector<16x128xf32>
    %cst_7 = arith.constant 4.471500e-02 : f32
    %12 = vector.broadcast %cst_7 : f32 to vector<16x128xf32>
    %13 = arith.mulf %12, %11 : vector<16x128xf32>
    %14 = arith.addf %9, %13 : vector<16x128xf32>
    %cst_8 = arith.constant 0.797884583 : f32
    %15 = vector.broadcast %cst_8 : f32 to vector<16x128xf32>
    %16 = arith.mulf %15, %14 : vector<16x128xf32>
    %17 = math.tanh %16 : vector<16x128xf32>
    %cst_9 = arith.constant 1.000000e+00 : f32
    %18 = vector.broadcast %cst_9 : f32 to vector<16x128xf32>
    %19 = arith.addf %18, %17 : vector<16x128xf32>
    %cst_10 = arith.constant 5.000000e-01 : f32
    %20 = vector.broadcast %cst_10 : f32 to vector<16x128xf32>
    %21 = arith.mulf %20, %19 : vector<16x128xf32>
    %22 = arith.mulf %9, %21 : vector<16x128xf32>
    %c0_11 = arith.constant 0 : index
    %c0_12 = arith.constant 0 : index
    %23 = vector.load %arg8[%c0_11, %c0_12] : memref<16x128xf32, #tpu.memory_space<vmem>>, vector<16x128xf32>
    %24 = arith.truncf %22 : vector<16x128xf32> to vector<16x128xbf16>
    %c0_13 = arith.constant 0 : index
    %c0_14 = arith.constant 0 : index
    %25 = vector.load %arg5[%c0_13, %c0_14] : memref<128x128xbf16, #tpu.memory_space<vmem>>, vector<128x128xbf16>
    %cst_15 = arith.constant dense<0.000000e+00> : vector<16x128xf32>
    %26 = tpu.matmul %24, %25, %cst_15 {dimension_numbers = #tpu.dot_dimension_numbers<[1], [0], [0], [1], [0, 0, 1, 1], [], []>} : vector<16x128xbf16>, vector<128x128xbf16>, vector<16x128xf32> -> vector<16x128xf32>
    %27 = arith.addf %23, %26 : vector<16x128xf32>
    %c0_16 = arith.constant 0 : index
    %c0_17 = arith.constant 0 : index
    %28 = vector.load %arg8[%c0_16, %c0_17] : memref<16x128xf32, #tpu.memory_space<vmem>>, vector<16x128xf32>
    tpu.vector_store %arg8[%c0_16, %c0_17], %27 {strides = array<i32>} : memref<16x128xf32, #tpu.memory_space<vmem>>, vector<16x128xf32>,
    %c0_i32_18 = arith.constant 0 : i32
    %29 = arith.cmpi eq, %arg1, %c0_i32_18 : i32
    %30 = arith.extui %29 : i1 to i32
    %c0_i32_19 = arith.constant 0 : i32
    %31 = arith.cmpi ne, %30, %c0_i32_19 : i32
    scf.if %31 {
      %c0_20 = arith.constant 0 : index
      %c0_21 = arith.constant 0 : index
      %32 = vector.load %arg8[%c0_20, %c0_21] : memref<16x128xf32, #tpu.memory_space<vmem>>, vector<16x128xf32>
      %c0_22 = arith.constant 0 : index
      %c0_23 = arith.constant 0 : index
      %33 = vector.load %arg6[%c0_22, %c0_23] : memref<1x128xf32, #tpu.memory_space<vmem>>, vector<1x128xf32>
      %34 = vector.broadcast %33 : vector<1x128xf32> to vector<16x128xf32>
      %35 = arith.addf %32, %34 : vector<16x128xf32>
      %c0_24 = arith.constant 0 : index
      %c0_25 = arith.constant 0 : index
      %36 = vector.load %arg7[%c0_24, %c0_25] : memref<16x128xf32, #tpu.memory_space<vmem>>, vector<16x128xf32>
      tpu.vector_store %arg7[%c0_24, %c0_25], %35 {strides = array<i32>} : memref<16x128xf32, #tpu.memory_space<vmem>>, vector<16x128xf32>,
    } else {
    }
    return
  }
  func.func @transform_0(%arg0: i32, %arg1: i32) -> (i32, i32) {
    %c0_i32 = arith.constant 0 : i32
    %c0_i32_0 = arith.constant 0 : i32
    return %arg0, %c0_i32 : i32, i32
  }
  func.func @transform_1(%arg0: i32, %arg1: i32) -> (i32, i32, i32) {
    %c0_i32 = arith.constant 0 : i32
    %c0_i32_0 = arith.constant 0 : i32
    %c0_i32_1 = arith.constant 0 : i32
    return %arg1, %c0_i32, %c0_i32_0 : i32, i32, i32
  }
  func.func @transform_2(%arg0: i32, %arg1: i32) -> (i32, i32) {
    %c0_i32 = arith.constant 0 : i32
    %c0_i32_0 = arith.constant 0 : i32
    return %c0_i32, %arg1 : i32, i32
  }
  func.func @transform_3(%arg0: i32, %arg1: i32) -> (i32, i32) {
    %c0_i32 = arith.constant 0 : i32
    %c0_i32_0 = arith.constant 0 : i32
    return %arg1, %c0_i32 : i32, i32
  }
  func.func @transform_4(%arg0: i32, %arg1: i32) -> (i32, i32) {
    %c0_i32 = arith.constant 0 : i32
    %c0_i32_0 = arith.constant 0 : i32
    %c0_i32_1 = arith.constant 0 : i32
    return %c0_i32, %c0_i32_0 : i32, i32
  }
  func.func @transform_5(%arg0: i32, %arg1: i32) -> (i32, i32) {
    %c0_i32 = arith.constant 0 : i32
    %c0_i32_0 = arith.constant 0 : i32
    return %arg0, %c0_i32 : i32, i32
  }
}

</mosaic_0001>

<bundles_post_ra>
// kernel: mlp_apply.1
= control target key start
LH: loop header
LB: loop body
LE: loop exit
PB: predicated region body
PF: predicated region fallthrough
CT: control target
= control target key end

     0   :  { %10 = vsyncpa [#allocation4], 0  ;;  %s401_s0 = inlined_call_operand.vmem [shape: bf16[16,32], index: 0, kind: input, shape index: {}]   ;;  %s402_s1 = inlined_call_operand.vmem [shape: bf16[1,32,128], index: 1, kind: input, shape index: {}]   ;;  %s403_s2 = inlined_call_operand.vmem [shape: f32[1,128], index: 2, kind: input, shape index: {}]   ;;  %s404_s3 = inlined_call_operand.hbm [shape: bf16[128,128], index: 3, kind: input, shape index: {}]   ;;  %s405_s4 = inlined_call_operand.vmem [shape: f32[1,128], index: 4, kind: input, shape index: {}]   ;;  %s406_s5 = inlined_call_operand.hbm [shape: f32[16,128], index: 5, kind: output, shape index: {}]  }
   0x1   :  { %11 = vsyncpa [#allocation5], 0  ;;  %s22_s20 = sshll.u32 %s404_s3, 4  ;;  %s344_s21 = smov [#allocation3]   ;;  %s23_s20 = int_to_ptr.hbm [resolvable:$true] %s22_s20 }
   0x2   :  { %s24_s22 = sshll.u32 %s344_s21, 4  ;;  %s345_s23 = smov 64   ;;  %s25_s22 = int_to_ptr.vmem [resolvable:$true] %s24_s22 }
   0x3   :  { %s346_s24 = smov 4  }
   0x4   :  { %30 = dma.hbm_to_vmem [thread:$0]  %s23_s20, 1024, %s25_s22, [#allocation4], %s345_s23, %s345_s23, %s346_s24  }
   0x5   :  { %340 = dma.done.wait [#allocation4], 1024  }
   0x6   :  { %341 = vsyncadd [#allocation4], 4294966272  ;;  %v271_v0 = vld [vmem:[%s402_s1 + $0x8] sm:$0xff]  ;;  %v270_v1 = vld [vmem:[%s402_s1] sm:$0xff]  ;;  %vm71_vm0 = vcmask 261120   ;;  %s347_s6 = smov [#allocation6]  }
   0x7   :  { %81 = vmatpush.bf16.msra.mxu0 %v271_v0  ;;  %v269_v2 = vld [vmem:[%s401_s0] sm:$0xff]  ;;  %v279_v3 = vld [vmem:[#allocation3 + $0x38] sm:$0xff]  ;;  %v278_v4 = vld [vmem:[#allocation3 + $0x30] sm:$0xff]  ;;  %s209_s7 = sshll.u32 %s347_s6, 4  ;;  %s211_s10 = sshll.u32 %s406_s5, 4  ;;  %s210_s7 = int_to_ptr.vmem [resolvable:$true] %s209_s7  ;;  %s212_s10 = int_to_ptr.hbm [resolvable:$true] %s211_s10 }
   0x8   :  { %174 = vmatpush.bf16.msra.mxu1 %v279_v3  ;;  %v277_v5 = vld [vmem:[#allocation3 + $0x28] sm:$0xff]  ;;  %v276_v6 = vld [vmem:[#allocation3 + $0x20] sm:$0xff]  ;;  %v275_v7 = vld [vmem:[#allocation3 + $0x18] sm:$0xff]  ;;  %s348_s11 = smov 128   ;;  %s349_s12 = smov 8  }
   0x9   :  { %v274_v8 = vld [vmem:[#allocation3 + $0x10] sm:$0xff]  ;;  %v273_v9 = vld [vmem:[#allocation3 + $0x8] sm:$0xff]  ;;  %v286_v10 = vld [vmem:[%s403_s2] ss:$0 sm:$0xff] }
   0xa   :  { %v272_v11 = vld [vmem:[#allocation3] sm:$0xff] }
   0xb   :  { %82 = vmatpush.bf16.msra.mxu0 %v270_v1  ;;  %v287_v35 = vld [vmem:[%s405_s4] ss:$0 sm:$0xff] }
   0xc   :  { %175 = vmatpush.bf16.msra.mxu1 %v278_v4 }
   0xe   :  { %236 = vmatmul.msk.bf16.vlgmr.msra.gmra.mxu0 %vm71_vm0, %v269_v2 }
  0x10   :  { %176 = vmatpush.bf16.msra.mxu1 %v277_v5 }
  0x14   :  { %177 = vmatpush.bf16.msra.mxu1 %v276_v6 }
  0x18   :  { %178 = vmatpush.bf16.msra.mxu1 %v275_v7 }
  0x1c   :  { %179 = vmatpush.bf16.msra.mxu1 %v274_v8 }
  0x20   :  { %180 = vmatpush.bf16.msra.mxu1 %v273_v9 }
  0x24   :  { %181 = vmatpush.bf16.msra.mxu1 %v272_v11 }
  0x8b   :  { %v84_v12 = vpop.f32.mrf.mxu0 }
  0x8c   :  { %v85_v13 = vadd.f32 %v286_v10, %v84_v12 }
  0x8e   :  { %v89_v14 = vmul.f32 %v85_v13, %v85_v13 }
  0x90   :  { %v91_v15 = vmul.f32 %v89_v14, %v85_v13 }
  0x92   :  { %v93_v16 = vmul.f32 0.044715, %v91_v15 }
  0x93   :  { %v86_v17 = vpop.f32.mrf.mxu0 }
  0x94   :  { %v95_v18 = vadd.f32 %v93_v16, %v85_v13  ;;  %v87_v19 = vadd.f32 %v286_v10, %v86_v17 }
  0x96   :  { %v90_v20 = vmul.f32 %v87_v19, %v87_v19  ;;  %v97_v21 = vmul.f32 0.7978846, %v95_v18 }
  0x98   :  { %v92_v22 = vmul.f32 %v90_v20, %v87_v19  ;;  %288 = vtanh.f32 %v97_v21 }
  0x9a   :  { %v94_v23 = vmul.f32 0.044715, %v92_v22 }
  0x9c   :  { %v96_v24 = vadd.f32 %v94_v23, %v87_v19 }
  0x9e   :  { %v98_v25 = vmul.f32 0.7978846, %v96_v24  ;;  %v289_v26 = vpop.eup %288 }
  0x9f   :  { %v101_v27 = vadd.f32 1.0, %v289_v26 }
  0xa0   :  { %290 = vtanh.f32 %v98_v25 }
  0xa1   :  { %v103_v30 = vmul.f32 0.5, %v101_v27 }
  0xa3   :  { %v105_v32 = vmul.f32 %v103_v30, %v85_v13 }
  0xa6   :  { %v291_v28 = vpop.eup %290 }
  0xa7   :  { %v102_v29 = vadd.f32 1.0, %v291_v28 }
  0xa9   :  { %v104_v31 = vmul.f32 0.5, %v102_v29 }
  0xab   :  { %v106_v33 = vmul.f32 %v104_v31, %v87_v19 }
  0xad   :  { %v109_v34 = vpack.c.bf16 %v106_v33, %v105_v32 }
  0xaf   :  { %182 = vmatmul.bf16.vlgmr.msra.gmra.mxu1 %v109_v34 }
 0x12c   :  { %v183_v36 = vpop.f32.mrf.mxu1 }
 0x12d   :  { %v201_v37 = vadd.f32 %v287_v35, %v183_v36 }
 0x12f   :  { %203 = vst [vmem:[#allocation6] sm:$0xff] %v201_v37 }
 0x134   :  { %v185_v38 = vpop.f32.mrf.mxu1 }
 0x135   :  { %v202_v39 = vadd.f32 %v287_v35, %v185_v38 }
 0x137   :  { %204 = vst [vmem:[#allocation6 + $0x8] sm:$0xff] %v202_v39 }
 0x138   :  { %217 = dma.vmem_to_hbm [thread:$0]  %s210_s7, 256, %s212_s10, [#allocation5], %s348_s11, %s348_s11, %s349_s12  }
 0x139   :  { %342 = dma.done.wait [#allocation5], 256  }
 0x13a   :  { %343 = vsyncadd [#allocation5], 4294967040 }
 0x13b   :  { %222 = vsyncpa [#allocation4], 1 }
 0x13c   :  { %223 = vsyncpa [#allocation5], 1 }

</bundles_post_ra>
